<compile_context>
chip_gen: v5e
topology: v5e:2x2
jax: 0.10.0
libtpu: 0.0.40
codegen_flags: <defaults>
</compile_context>

<pallas_src>
import functools

import jax
import jax.numpy as jnp
from jax import lax
from jax.experimental import pallas as pl
from jax.experimental.pallas import tpu as pltpu

WIDTH = 1000          # hidden width from the module
BN_EPS = 1e-5         # PyTorch BatchNorm1d default


# --------------------------------------------------------------------------
# helpers
# --------------------------------------------------------------------------
def _round_up(x, m):
    return ((x + m - 1) // m) * m


def _cdiv(a, b):
    return -(-a // b)


def _pad_axis(a, target, axis):
    pad = target - a.shape[axis]
    if pad <= 0:
        return a
    widths = [(0, 0)] * a.ndim
    widths[axis] = (0, pad)
    return jnp.pad(a, widths)


def _full_spec(shape):
    return pl.BlockSpec(shape, lambda: (0,) * len(shape))


# --------------------------------------------------------------------------
# kernels
# --------------------------------------------------------------------------
def _fused_kernel(x_ref, w1_ref, gamma_ref, beta_ref, w2_ref, b2_ref, o_ref,
                  *, n_rows, matmul_dtype):
    """Single-block forward: matmul -> BN(batch stats) -> ReLU -> matmul."""
    # Linear 1 (no bias), f32 accumulation on the MXU.
    h = jnp.dot(x_ref[...], w1_ref[...], preferred_element_type=jnp.float32)

    # BatchNorm1d batch stats folded into per-column scale/shift.
    inv_n = 1.0 / n_rows                                   # true batch size
    mean = jnp.sum(h, axis=0, keepdims=True) * inv_n       # [1, Wp]
    ex2 = jnp.sum(h * h, axis=0, keepdims=True) * inv_n
    var = jnp.maximum(ex2 - mean * mean, 0.0)              # guard cancellation
    scale = gamma_ref[...] * lax.rsqrt(var + BN_EPS)       # rsqrt on EUP
    shift = beta_ref[...] - mean * scale

    # BN + ReLU: one mul + one add per element, then Linear 2 (bias).
    y = jnp.maximum(h * scale + shift, 0.0).astype(matmul_dtype)
    out = jnp.dot(y, w2_ref[...], preferred_element_type=jnp.float32)
    o_ref[...] = out + b2_ref[...]


def _stats_kernel(x_ref, w1_ref, sum_ref, sumsq_ref):
    """Pass 1 (stats only): h = x @ w1 in VMEM, accumulate column sum/sumsq.

    Grid = (parts, tiles_per_part); the leading axis is 'parallel' so each
    TensorCore owns its own [1, 8, Wp] partial-accumulator block.
    """
    h = jnp.dot(x_ref[...], w1_ref[...], preferred_element_type=jnp.float32)

    @pl.when(pl.program_id(1) == 0)
    def _init():
        sum_ref[...] = jnp.zeros_like(sum_ref)
        sumsq_ref[...] = jnp.zeros_like(sumsq_ref)

    s = jnp.sum(h, axis=0, keepdims=True)          # [1, Wp]
    s2 = jnp.sum(h * h, axis=0, keepdims=True)     # [1, Wp]
    # Broadcast over the 8 sublanes of the accumulator block (all identical).
    sum_ref[...] += s[None]
    sumsq_ref[...] += s2[None]


def _apply_kernel(x_ref, w1_ref, scale_ref, shift_ref, w2_ref, b2_ref, o_ref,
                  *, matmul_dtype):
    """Pass 2: recompute h = x @ w1, folded BN + ReLU, second matmul."""
    h = jnp.dot(x_ref[...], w1_ref[...], preferred_element_type=jnp.float32)
    y = jnp.maximum(h * scale_ref[...] + shift_ref[...], 0.0).astype(matmul_dtype)
    out = jnp.dot(y, w2_ref[...], preferred_element_type=jnp.float32)
    o_ref[...] = out + b2_ref[...]


# --------------------------------------------------------------------------
# wrapper
# --------------------------------------------------------------------------
def ishida_mlp_forward(x, w1, gamma, beta, w2, b2, *,
                       block_rows=512, fuse_threshold=1024,
                       stats_partials=2, matmul_dtype=jnp.bfloat16):
    """Forward pass of IshidaMLP_benchmark.

    x     : [N, input_dim] float32
    w1    : [input_dim, 1000]  (Linear1 weight, pre-transposed, no bias)
    gamma : [1000] or [1,1000] (BatchNorm1d weight)
    beta  : [1000] or [1,1000] (BatchNorm1d bias)
    w2    : [1000, output_dim] (Linear2 weight, pre-transposed)
    b2    : [output_dim] or [1, output_dim]
    Returns [N, output_dim] float32.

    fuse_threshold: batches up to this size take the fused single-block path
      (everything resident in VMEM, no HBM hidden-activation traffic).  1024
      is safe on all generations; on 128 MiB-VMEM chips (v5e/v6e) it can be
      raised to ~4096 together with vmem_limit_bytes.  Larger batches use a
      two-pass pipeline (stats pass + apply pass) that recomputes h in pass 2.
    """
    n, d = x.shape
    width = w1.shape[1]
    out_dim = w2.shape[1]
    f32 = jnp.float32

    width_pad = _round_up(width, 128)              # 1000 -> 1024 lane-dense hidden
    out_pad = _round_up(max(out_dim, 128), 128)    # 10   -> 128  lane-dense output

    # Zero-padded / reshaped parameters (padding is exact: padded hidden
    # columns get gamma=0, beta=0; padded w2 rows/cols are zero).
    gamma_p = _pad_axis(jnp.reshape(gamma, (1, width)).astype(f32), width_pad, 1)
    beta_p = _pad_axis(jnp.reshape(beta, (1, width)).astype(f32), width_pad, 1)
    b2_p = _pad_axis(jnp.reshape(b2, (1, out_dim)).astype(f32), out_pad, 1)
    w1_p = _pad_axis(w1.astype(f32), width_pad, 1).astype(matmul_dtype)
    w2_p = _pad_axis(_pad_axis(w2.astype(f32), width_pad, 0), out_pad, 1)
    w2_p = w2_p.astype(matmul_dtype)
    x_mm = x.astype(matmul_dtype)                  # cast once, halves x DMA bytes
    w_bytes = (w1_p.size * w1_p.dtype.itemsize
               + w2_p.size * w2_p.dtype.itemsize)

    if n <= fuse_threshold:
        # ---------------- fused single-block path (small batch) -----------
        # TODO(synk): on v7x this is single-TensorCore; a row-parallel grid
        #             with the recompute structure would use both cores.
        n_pad = _round_up(max(n, 8), 8)
        xp = _pad_axis(x_mm, n_pad, 0)             # zero rows don't bias stats
        flops = (2 * n_pad * d * width_pad + 2 * n_pad * width_pad * out_pad
                 + 6 * n_pad * width_pad)
        bytes_acc = (xp.size * xp.dtype.itemsize + w_bytes
                     + 4 * (gamma_p.size + beta_p.size + b2_p.size
                            + n_pad * out_pad))
        out_p = pl.pallas_call(
            functools.partial(_fused_kernel, n_rows=n, matmul_dtype=matmul_dtype),
            out_shape=jax.ShapeDtypeStruct((n_pad, out_pad), f32),
            in_specs=[_full_spec(xp.shape), _full_spec(w1_p.shape),
                      _full_spec(gamma_p.shape), _full_spec(beta_p.shape),
                      _full_spec(w2_p.shape), _full_spec(b2_p.shape)],
            out_specs=_full_spec((n_pad, out_pad)),
            cost_estimate=pl.CostEstimate(flops=int(flops),
                                          transcendentals=int(width_pad),
                                          bytes_accessed=int(bytes_acc)),
        )(xp, w1_p, gamma_p, beta_p, w2_p, b2_p)
        return out_p[:n, :out_dim]

    # ---------------- batch-tiled two-pass path (large batch) -------------
    tm = max(8, (block_rows // 8) * 8)
    num_tiles = _cdiv(n, tm)
    parts = max(1, min(stats_partials, num_tiles))     # v7x: 2 TCs split pass 1
    tiles_per_part = _cdiv(num_tiles, parts)
    n_pad = parts * tiles_per_part * tm
    xp = _pad_axis(x_mm, n_pad, 0)                     # zero rows don't bias stats

    # ---- Pass 1: stats only (h never leaves VMEM) -------------------------
    p1_flops = 2 * n_pad * d * width_pad + 3 * n_pad * width_pad
    p1_bytes = (xp.size * xp.dtype.itemsize
                + w1_p.size * w1_p.dtype.itemsize
                + 4 * 2 * parts * 8 * width_pad)
    hsum, hsumsq = pl.pallas_call(
        _stats_kernel,
        out_shape=(jax.ShapeDtypeStruct((parts, 8, width_pad), f32),
                   jax.ShapeDtypeStruct((parts, 8, width_pad), f32)),
        grid=(parts, tiles_per_part),
        in_specs=[pl.BlockSpec((tm, d),
                               lambda p, i: (p * tiles_per_part + i, 0)),
                  pl.BlockSpec((d, width_pad), lambda p, i: (0, 0))],
        out_specs=(pl.BlockSpec((1, 8, width_pad), lambda p, i: (p, 0, 0)),
                   pl.BlockSpec((1, 8, width_pad), lambda p, i: (p, 0, 0))),
        compiler_params=pltpu.CompilerParams(
            dimension_semantics=("parallel", "arbitrary")),
        cost_estimate=pl.CostEstimate(flops=int(p1_flops), transcendentals=0,
                                      bytes_accessed=int(p1_bytes)),
    )(xp, w1_p)

    # ---- BN fold (tiny [1, 1024] JAX ops between the two calls) -----------
    total = hsum[:, 0, :].sum(axis=0, keepdims=True)       # [1, Wp]
    total2 = hsumsq[:, 0, :].sum(axis=0, keepdims=True)
    mean = total / n
    var = jnp.maximum(total2 / n - mean * mean, 0.0)        # guard cancellation
    scale = gamma_p * lax.rsqrt(var + BN_EPS)
    shift = beta_p - mean * scale

    # ---- Pass 2: recompute h, folded BN + ReLU, second matmul -------------
    n_out = num_tiles * tm
    p2_flops = (2 * n_out * d * width_pad + 4 * n_out * width_pad
                + 2 * n_out * width_pad * out_pad)
    p2_bytes = (n_out * d * xp.dtype.itemsize + w_bytes
                + 4 * (2 * width_pad + out_pad + n_out * out_pad))
    out_p = pl.pallas_call(
        functools.partial(_apply_kernel, matmul_dtype=matmul_dtype),
        out_shape=jax.ShapeDtypeStruct((n_out, out_pad), f32),
        grid=(num_tiles,),
        in_specs=[pl.BlockSpec((tm, d), lambda i: (i, 0)),
                  pl.BlockSpec((d, width_pad), lambda i: (0, 0)),
                  pl.BlockSpec((1, width_pad), lambda i: (0, 0)),
                  pl.BlockSpec((1, width_pad), lambda i: (0, 0)),
                  pl.BlockSpec((width_pad, out_pad), lambda i: (0, 0)),
                  pl.BlockSpec((1, out_pad), lambda i: (0, 0))],
        out_specs=pl.BlockSpec((tm, out_pad), lambda i: (i, 0)),
        compiler_params=pltpu.CompilerParams(
            dimension_semantics=("parallel",)),   # v7x: split batch over TCs
        cost_estimate=pl.CostEstimate(flops=int(p2_flops), transcendentals=0,
                                      bytes_accessed=int(p2_bytes)),
    )(xp, w1_p, scale, shift, w2_p, b2_p)

    # Slice away batch / lane padding.
    return out_p[:n, :out_dim]


# --------------------------------------------------------------------------
# plain-JAX reference (for sanity checking)
# --------------------------------------------------------------------------
def reference_forward(x, w1, gamma, beta, w2, b2):
    h = x @ w1
    mean = jnp.mean(h, axis=0, keepdims=True)
    var = jnp.mean((h - mean) ** 2, axis=0, keepdims=True)
    h = (h - mean) / jnp.sqrt(var + BN_EPS)
    h = h * gamma[None, :] + beta[None, :]
    h = jnp.maximum(h, 0.0)
    return h @ w2 + b2[None, :]


# --------------------------------------------------------------------------
# demo / self-test
# --------------------------------------------------------------------------
if __name__ == "__main__":
    INPUT_DIM, OUTPUT_DIM = 16, 10

    key = jax.random.PRNGKey(0)
    kx, k1, k2, kb, kx2 = jax.random.split(key, 5)

    # Parameters (shapes match nn.Module.__init__; linear weights pre-transposed).
    w1 = jax.random.normal(k1, (INPUT_DIM, WIDTH), jnp.float32) / INPUT_DIM ** 0.5
    gamma = jnp.ones((WIDTH,), jnp.float32)     # BatchNorm1d default init
    beta = jnp.zeros((WIDTH,), jnp.float32)
    w2 = jax.random.normal(k2, (WIDTH, OUTPUT_DIM), jnp.float32) / WIDTH ** 0.5
    b2 = jax.random.uniform(kb, (OUTPUT_DIM,), jnp.float32,
                            minval=-1.0 / WIDTH ** 0.5, maxval=1.0 / WIDTH ** 0.5)

    x_small = jax.random.normal(kx, (8, INPUT_DIM), jnp.float32)
    x_big = jax.random.normal(kx2, (400, INPUT_DIM), jnp.float32)
    ref_small = reference_forward(x_small, w1, gamma, beta, w2, b2)
    ref_big = reference_forward(x_big, w1, gamma, beta, w2, b2)

    # --- 1. small batch, f32 matmuls -> fused kernel, tight tolerance ------
    out = jax.block_until_ready(
        ishida_mlp_forward(x_small, w1, gamma, beta, w2, b2,
                           matmul_dtype=jnp.float32))
    assert out.shape == (8, OUTPUT_DIM)
    assert jnp.allclose(out, ref_small, atol=2e-4, rtol=2e-4), "fused f32 mismatch"

    # --- 2. larger batch, f32 matmuls -> two-pass pipeline, tight tolerance --
    out2 = jax.block_until_ready(
        ishida_mlp_forward(x_big, w1, gamma, beta, w2, b2,
                           block_rows=128, fuse_threshold=0,
                           matmul_dtype=jnp.float32))
    assert out2.shape == (400, OUTPUT_DIM)
    assert jnp.allclose(out2, ref_big, atol=2e-4, rtol=2e-4), "tiled f32 mismatch"

    # --- 3. default bf16 matmul operands (f32 accumulation), both paths ------
    out3 = jax.block_until_ready(
        ishida_mlp_forward(x_small, w1, gamma, beta, w2, b2))
    assert out3.shape == (8, OUTPUT_DIM)
    assert jnp.allclose(out3, ref_small, atol=5e-2, rtol=5e-2), "fused bf16 mismatch"

    out4 = jax.block_until_ready(
        ishida_mlp_forward(x_big, w1, gamma, beta, w2, b2,
                           block_rows=128, fuse_threshold=0))
    assert out4.shape == (400, OUTPUT_DIM)
    assert jnp.allclose(out4, ref_big, atol=5e-2, rtol=5e-2), "tiled bf16 mismatch"

    print("KERNEL_OK")
</pallas_src>

<mosaic_0001>
module attributes {stable_mosaic.version = 11 : i64} {
  func.func @_fused_kernel(%arg0: memref<8x16xf32, #tpu.memory_space<vmem>>, %arg1: memref<16x1024xf32, #tpu.memory_space<vmem>>, %arg2: memref<1x1024xf32, #tpu.memory_space<vmem>>, %arg3: memref<1x1024xf32, #tpu.memory_space<vmem>>, %arg4: memref<1024x128xf32, #tpu.memory_space<vmem>>, %arg5: memref<1x128xf32, #tpu.memory_space<vmem>>, %arg6: memref<8x128xf32, #tpu.memory_space<vmem>>) attributes {dimension_semantics = [], scalar_prefetch = 0 : i64, scratch_operands = 0 : i64, tpu.core_type = #tpu.core_type<tc>} {
    %c0 = arith.constant 0 : index
    %c0_0 = arith.constant 0 : index
    %0 = vector.load %arg0[%c0, %c0_0] : memref<8x16xf32, #tpu.memory_space<vmem>>, vector<8x16xf32>
    %c0_1 = arith.constant 0 : index
    %c0_2 = arith.constant 0 : index
    %1 = vector.load %arg1[%c0_1, %c0_2] : memref<16x1024xf32, #tpu.memory_space<vmem>>, vector<16x1024xf32>
    %cst = arith.constant dense<0.000000e+00> : vector<8x1024xf32>
    %2 = tpu.matmul %0, %1, %cst {dimension_numbers = #tpu.dot_dimension_numbers<[1], [0], [0], [1], [0, 0, 1, 1], [], []>} : vector<8x16xf32>, vector<16x1024xf32>, vector<8x1024xf32> -> vector<8x1024xf32>
    %cst_3 = arith.constant dense<0.000000e+00> : vector<1024xf32>
    %3 = vector.multi_reduction <add>, %2, %cst_3 [0] : vector<8x1024xf32> to vector<1024xf32>
    %4 = vector.shape_cast %3 : vector<1024xf32> to vector<1x1024xf32>
    %cst_4 = arith.constant 1.250000e-01 : f32
    %5 = vector.broadcast %cst_4 : f32 to vector<1x1024xf32>
    %6 = arith.mulf %4, %5 : vector<1x1024xf32>
    %7 = arith.mulf %2, %2 : vector<8x1024xf32>
    %cst_5 = arith.constant dense<0.000000e+00> : vector<1024xf32>
    %8 = vector.multi_reduction <add>, %7, %cst_5 [0] : vector<8x1024xf32> to vector<1024xf32>
    %9 = vector.shape_cast %8 : vector<1024xf32> to vector<1x1024xf32>
    %cst_6 = arith.constant 1.250000e-01 : f32
    %10 = vector.broadcast %cst_6 : f32 to vector<1x1024xf32>
    %11 = arith.mulf %9, %10 : vector<1x1024xf32>
    %12 = arith.mulf %6, %6 : vector<1x1024xf32>
    %13 = arith.subf %11, %12 : vector<1x1024xf32>
    %cst_7 = arith.constant 0.000000e+00 : f32
    %14 = vector.broadcast %cst_7 : f32 to vector<1x1024xf32>
    %15 = arith.maximumf %13, %14 : vector<1x1024xf32>
    %c0_8 = arith.constant 0 : index
    %c0_9 = arith.constant 0 : index
    %16 = vector.load %arg2[%c0_8, %c0_9] : memref<1x1024xf32, #tpu.memory_space<vmem>>, vector<1x1024xf32>
    %cst_10 = arith.constant 9.99999974E-6 : f32
    %17 = vector.broadcast %cst_10 : f32 to vector<1x1024xf32>
    %18 = arith.addf %15, %17 : vector<1x1024xf32>
    %19 = math.rsqrt %18 : vector<1x1024xf32>
    %20 = arith.mulf %16, %19 : vector<1x1024xf32>
    %c0_11 = arith.constant 0 : index
    %c0_12 = arith.constant 0 : index
    %21 = vector.load %arg3[%c0_11, %c0_12] : memref<1x1024xf32, #tpu.memory_space<vmem>>, vector<1x1024xf32>
    %22 = arith.mulf %6, %20 : vector<1x1024xf32>
    %23 = arith.subf %21, %22 : vector<1x1024xf32>
    %24 = vector.broadcast %20 : vector<1x1024xf32> to vector<8x1024xf32>
    %25 = arith.mulf %2, %24 : vector<8x1024xf32>
    %26 = vector.broadcast %23 : vector<1x1024xf32> to vector<8x1024xf32>
    %27 = arith.addf %25, %26 : vector<8x1024xf32>
    %cst_13 = arith.constant 0.000000e+00 : f32
    %28 = vector.broadcast %cst_13 : f32 to vector<8x1024xf32>
    %29 = arith.maximumf %27, %28 : vector<8x1024xf32>
    %c0_14 = arith.constant 0 : index
    %c0_15 = arith.constant 0 : index
    %30 = vector.load %arg4[%c0_14, %c0_15] : memref<1024x128xf32, #tpu.memory_space<vmem>>, vector<1024x128xf32>
    %cst_16 = arith.constant dense<0.000000e+00> : vector<8x128xf32>
    %31 = tpu.matmul %29, %30, %cst_16 {dimension_numbers = #tpu.dot_dimension_numbers<[1], [0], [0], [1], [0, 0, 1, 1], [], []>} : vector<8x1024xf32>, vector<1024x128xf32>, vector<8x128xf32> -> vector<8x128xf32>
    %c0_17 = arith.constant 0 : index
    %c0_18 = arith.constant 0 : index
    %32 = vector.load %arg5[%c0_17, %c0_18] : memref<1x128xf32, #tpu.memory_space<vmem>>, vector<1x128xf32>
    %33 = vector.broadcast %32 : vector<1x128xf32> to vector<8x128xf32>
    %34 = arith.addf %31, %33 : vector<8x128xf32>
    %c0_19 = arith.constant 0 : index
    %c0_20 = arith.constant 0 : index
    %35 = vector.load %arg6[%c0_19, %c0_20] : memref<8x128xf32, #tpu.memory_space<vmem>>, vector<8x128xf32>
    tpu.vector_store %arg6[%c0_19, %c0_20], %34 {strides = array<i32>} : memref<8x128xf32, #tpu.memory_space<vmem>>, vector<8x128xf32>,
    return
  }
}

</mosaic_0001>

<bundles_post_ra>
// kernel: tpu_custom_call.1
= control target key start
LH: loop header
LB: loop body
LE: loop exit
PB: predicated region body
PF: predicated region fallthrough
CT: control target
= control target key end

     0   :  { %11 = vsyncpa [#allocation3], 0  ;;  %s1499_s0 = inlined_call_operand.hbm [shape: f32[8,16], index: 0, kind: input, shape index: {}]   ;;  %s1500_s1 = inlined_call_operand.hbm [shape: f32[16,1024], index: 1, kind: input, shape index: {}]   ;;  %s1501_s2 = inlined_call_operand.hbm [shape: f32[1,1024], index: 2, kind: input, shape index: {}]   ;;  %s1502_s3 = inlined_call_operand.hbm [shape: f32[1,1024], index: 3, kind: input, shape index: {}]   ;;  %s1503_s4 = inlined_call_operand.hbm [shape: f32[1024,128], index: 4, kind: input, shape index: {}]   ;;  %s1504_s5 = inlined_call_operand.vmem [shape: f32[1,128], index: 5, kind: input, shape index: {}]   ;;  %s1505_s6 = inlined_call_operand.hbm [shape: f32[8,128], index: 6, kind: output, shape index: {}]  }
   0x1   :  { %12 = vsyncpa [#allocation6], 0 }
   0x2   :  { %13 = vsyncpa [#allocation9], 0  ;;  %s30_s23 = sshll.u32 %s1500_s1, 4  ;;  %s31_s23 = int_to_ptr.hbm [resolvable:$true] %s30_s23 }
   0x3   :  { %14 = vsyncpa [#allocation4], 0  ;;  %s1131_s24 = smov [#allocation5]   ;;  %s55_s28 = sshll.u32 %s1502_s3, 4  ;;  %s56_s28 = int_to_ptr.hbm [resolvable:$true] %s55_s28 }
   0x4   :  { %s32_s25 = sshll.u32 %s1131_s24, 4  ;;  %s1132_s29 = smov 1024   ;;  %s33_s25 = int_to_ptr.vmem [resolvable:$true] %s32_s25 }
   0x5   :  { %s1133_s30 = smov 64   ;;  %s1134_s7 = smov [#allocation8]  }
   0x6   :  { %38 = dma.hbm_to_vmem [thread:$0]  %s31_s23, 2048, %s33_s25, [#allocation6], %s1132_s29, %s1132_s29, %s1133_s30  }
   0x7   :  { %s57_s8 = sshll.u32 %s1134_s7, 4  ;;  %s20_s11 = sshll.u32 %s1499_s0, 4  ;;  %s58_s8 = int_to_ptr.vmem [resolvable:$true] %s57_s8  ;;  %s21_s11 = int_to_ptr.hbm [resolvable:$true] %s20_s11 }
   0x8   :  { %60 = dma.hbm_to_vmem [thread:$0]  %s56_s28, 128, %s58_s8, [#allocation9]  }
   0x9   :  { %s44_s13 = sshll.u32 %s1501_s2, 4  ;;  %s1135_s14 = smov [#allocation2]   ;;  %s45_s13 = int_to_ptr.hbm [resolvable:$true] %s44_s13 }
   0xa   :  { %s22_s15 = sshll.u32 %s1135_s14, 4  ;;  %s1136_s3 = smov [#allocation7]   ;;  %s23_s15 = int_to_ptr.vmem [resolvable:$true] %s22_s15 }
   0xb   :  { %25 = dma.hbm_to_vmem [thread:$0]  %s21_s11, 128, %s23_s15, [#allocation3]  }
   0xc   :  { %s46_s16 = sshll.u32 %s1136_s3, 4  ;;  %s65_s19 = sshll.u32 %s1503_s4, 4  ;;  %s47_s16 = int_to_ptr.vmem [resolvable:$true] %s46_s16  ;;  %s66_s19 = int_to_ptr.hbm [resolvable:$true] %s65_s19 }
   0xd   :  { %49 = dma.hbm_to_vmem [thread:$0]  %s45_s13, 128, %s47_s16, [#allocation6]  }
   0xe   :  { %s1137_s0 = smov [#allocation10]   ;;  %s1138_s21 = smov 128  }
   0xf   :  { %s67_s20 = sshll.u32 %s1137_s0, 4  ;;  %s1139_s22 = smov 8   ;;  %s68_s20 = int_to_ptr.vmem [resolvable:$true] %s67_s20 }
  0x10   :  { %73 = dma.hbm_to_vmem [thread:$0]  %s66_s19, 16384, %s68_s20, [#allocation9], %s1138_s21, %s1138_s21, %s1139_s22  }
  0x11   :  { %1123 = dma.done.wait [#allocation3], 128  }
  0x12   :  { %1124 = vsyncadd [#allocation3], 4294967168 }
  0x13   :  { %1125 = dma.done.wait [#allocation6], 2176  }
  0x14   :  { %1126 = vsyncadd [#allocation6], 4294965120 }
  0x15   :  { %1127 = dma.done.wait [#allocation9], 16512  }
  0x16   :  { %1128 = vsyncadd [#allocation9], 4294950784  ;;  %v105_v0 = vld [vmem:[#allocation5 + $0x40] sm:$0xff]  ;;  %v106_v1 = vld [vmem:[#allocation5 + $0x48] sm:$0xff]  ;;  %vm113_vm0 = vcmask 130048   ;;  %s1140_s23 = smov [#allocation11]  }
  0x17   :  { %v107_v2 = vld [vmem:[#allocation5 + $0x50] sm:$0xff]  ;;  %131 = vmatpush.msra.mxu0 %v105_v0  ;;  %151 = vmatpush.msra.mxu1 %v106_v1  ;;  %v108_v3 = vld [vmem:[#allocation5 + $0x58] sm:$0xff]  ;;  %v97_v4 = vld [vmem:[#allocation5] sm:$0xff]  ;;  %s930_s24 = sshll.u32 %s1140_s23, 4  ;;  %s932_s27 = sshll.u32 %s1505_s6, 4  ;;  %s931_s24 = int_to_ptr.vmem [resolvable:$true] %s930_s24  ;;  %s933_s27 = int_to_ptr.hbm [resolvable:$true] %s932_s27 }
  0x18   :  { %v98_v5 = vld [vmem:[#allocation5 + $0x8] sm:$0xff]  ;;  %171 = vmatpush.msra.mxu2 %v107_v2  ;;  %191 = vmatpush.msra.mxu3 %v108_v3  ;;  %v99_v6 = vld [vmem:[#allocation5 + $0x10] sm:$0xff]  ;;  %v100_v7 = vld [vmem:[#allocation5 + $0x18] sm:$0xff] }
  0x19   :  { %v96_v8 = vld [vmem:[#allocation2] sm:$0xff]  ;;  %132 = vmatpush.msra.mxu0 %v97_v4  ;;  %152 = vmatpush.msra.mxu1 %v98_v5  ;;  %v111_v9 = vld [vmem:[#allocation5 + $0x70] sm:$0xff]  ;;  %v109_v11 = vld [vmem:[#allocation5 + $0x60] sm:$0xff] }
  0x1a   :  { %172 = vmatpush.msra.mxu2 %v99_v6  ;;  %192 = vmatpush.msra.mxu3 %v100_v7  ;;  %v112_v10 = vld [vmem:[#allocation5 + $0x78] sm:$0xff]  ;;  %v110_v12 = vld [vmem:[#allocation5 + $0x68] sm:$0xff]  ;;  %v103_v13 = vld [vmem:[#allocation5 + $0x30] sm:$0xff] }
  0x1b   :  { %944 = vmatmul.msk.f32.vlgmr.msra.gmra.mxu0 %vm113_vm0, %v96_v8  ;;  %945 = vmatmul.msk.f32.vlgmr.msra.gmra.mxu1 %vm113_vm0, %v96_v8  ;;  %v104_v14 = vld [vmem:[#allocation5 + $0x38] sm:$0xff]  ;;  %v101_v15 = vld [vmem:[#allocation5 + $0x20] sm:$0xff]  ;;  %v102_v16 = vld [vmem:[#allocation5 + $0x28] sm:$0xff] }
  0x1c   :  { %946 = vmatmul.msk.f32.vlgmr.msra.gmra.mxu2 %vm113_vm0, %v96_v8  ;;  %947 = vmatmul.msk.f32.vlgmr.msra.gmra.mxu3 %vm113_vm0, %v96_v8 }
  0x1d   :  { %251 = vmatpush.msrb.mxu2 %v111_v9  ;;  %271 = vmatpush.msrb.mxu3 %v112_v10 }
  0x1e   :  { %211 = vmatpush.msrb.mxu0 %v109_v11  ;;  %231 = vmatpush.msrb.mxu1 %v110_v12 }
  0x1f   :  { %252 = vmatpush.msrb.mxu2 %v103_v13  ;;  %272 = vmatpush.msrb.mxu3 %v104_v14  ;;  %v647_v14 = vld [vmem:[#allocation10 + $0x78] sm:$0xff] }
  0x20   :  { %212 = vmatpush.msrb.mxu0 %v101_v15  ;;  %232 = vmatpush.msrb.mxu1 %v102_v16  ;;  %v663_v15 = vld [vmem:[#allocation10 + $0xf8] sm:$0xff] }
  0x21   :  { %v679_v16 = vld [vmem:[#allocation10 + $0x178] sm:$0xff] }
  0x22   :  { %764 = vmatpush.msra.mxu0 %v647_v14  ;;  %784 = vmatpush.msra.mxu1 %v663_v15 }
  0x23   :  { %948 = vmatmul.msk.f32.vlgmr.msrb.gmra.mxu0 %vm113_vm0, %v96_v8  ;;  %949 = vmatmul.msk.f32.vlgmr.msrb.gmra.mxu1 %vm113_vm0, %v96_v8 }
  0x24   :  { %950 = vmatmul.msk.f32.vlgmr.msrb.gmra.mxu2 %vm113_vm0, %v96_v8  ;;  %951 = vmatmul.msk.f32.vlgmr.msrb.gmra.mxu3 %vm113_vm0, %v96_v8 }
  0x25   :  { %804 = vmatpush.msra.mxu2 %v679_v16 }
  0x98   :  { %v1199_v17 = vpop.f32.mrf.mxu1  ;;  %v1204_v20 = vpop.f32.mrf.mxu0 }
  0x99   :  { %v283_v18 = vrot.slane %v1199_v17, 4  ;;  %v334_v19 = vmul.f32 %v1199_v17, %v1199_v17  ;;  %v277_v23 = vrot.slane %v1204_v20, 4  ;;  %v333_v24 = vmul.f32 %v1204_v20, %v1204_v20 }
  0x9b   :  { %v284_v21 = vadd.f32 %v283_v18, %v1199_v17  ;;  %v347_v22 = vrot.slane %v334_v19, 4  ;;  %v278_v33 = vadd.f32 %v277_v23, %v1204_v20  ;;  %v341_v38 = vrot.slane %v333_v24, 4  ;;  %v695_v23 = vld [vmem:[#allocation10 + $0x1f8] sm:$0xff] }
  0x9c   :  { %824 = vmatpush.msra.mxu3 %v695_v23 }
  0x9d   :  { %v285_v25 = vrot.slane %v284_v21, 2  ;;  %v348_v26 = vadd.f32 %v347_v22, %v334_v19  ;;  %v279_v45 = vrot.slane %v278_v33, 2  ;;  %v342_v51 = vadd.f32 %v341_v38, %v333_v24 }
  0x9f   :  { %v1210_v27 = vpop.f32.mrf.mxu2  ;;  %v1212_v28 = vpop.f32.mrf.mxu3  ;;  %v286_v39 = vadd.f32 %v285_v25, %v284_v21  ;;  %v349_v40 = vrot.slane %v348_v26, 2  ;;  %v280_v58 = vadd.f32 %v279_v45, %v278_v33  ;;  %v343_v61 = vrot.slane %v342_v51, 2 }
  0xa0   :  { %v289_v29 = vrot.slane %v1210_v27, 4  ;;  %v335_v30 = vmul.f32 %v1210_v27, %v1210_v27  ;;  %v295_v31 = vrot.slane %v1212_v28, 4  ;;  %v336_v32 = vmul.f32 %v1212_v28, %v1212_v28  ;;  %v1223_v50 = vpop.f32.mrf.mxu0  ;;  %v1229_v8 = vpop.f32.mrf.mxu1 }
  0xa1   :  { %v287_v52 = vrot.slane %v286_v39, 1  ;;  %v350_v53 = vadd.f32 %v349_v40, %v348_v26  ;;  %v301_v56 = vrot.slane %v1223_v50, 4  ;;  %v337_v57 = vmul.f32 %v1223_v50, %v1223_v50 }
  0xa2   :  { %v290_v34 = vadd.f32 %v289_v29, %v1210_v27  ;;  %v353_v35 = vrot.slane %v335_v30, 4  ;;  %v296_v36 = vadd.f32 %v295_v31, %v1212_v28  ;;  %v359_v37 = vrot.slane %v336_v32, 4  ;;  %v662_v31 = vld [vmem:[#allocation10 + $0xf0] sm:$0xff] }
  0xa3   :  { %v288_v62 = vadd.f32 %v287_v52, %v286_v39  ;;  %v302_v63 = vadd.f32 %v301_v56, %v1223_v50  ;;  %v365_v0 = vrot.slane %v337_v57, 4  ;;  %v351_v1 = vrot.slane %v350_v53, 1  ;;  %785 = vmatpush.msra.mxu1 %v662_v31 }
  0xa4   :  { %v291_v41 = vrot.slane %v290_v34, 2  ;;  %v354_v42 = vadd.f32 %v353_v35, %v335_v30  ;;  %v297_v43 = vrot.slane %v296_v36, 2  ;;  %v360_v44 = vadd.f32 %v359_v37, %v336_v32  ;;  %v646_v30 = vld [vmem:[#allocation10 + $0x70] sm:$0xff] }
  0xa5   :  { %v303_v4 = vrot.slane %v302_v63, 2  ;;  %v366_v5 = vadd.f32 %v365_v0, %v337_v57  ;;  %v281_v10 = vrot.slane %v280_v58, 1  ;;  %v1233_v11 = vadd.f32 %v343_v61, %v342_v51  ;;  %v678_v32 = vld [vmem:[#allocation10 + $0x170] sm:$0xff]  ;;  %765 = vmatpush.msra.mxu0 %v646_v30  ;;  %v692_v61 = vld [vmem:[#allocation10 + $0x1e0] sm:$0xff] }
  0xa6   :  { %v292_v46 = vadd.f32 %v291_v41, %v290_v34  ;;  %v355_v47 = vrot.slane %v354_v42, 2  ;;  %v298_v48 = vadd.f32 %v297_v43, %v296_v36  ;;  %v361_v49 = vrot.slane %v360_v44, 2  ;;  %v694_v37 = vld [vmem:[#allocation10 + $0x1f0] sm:$0xff]  ;;  %805 = vmatpush.msra.mxu2 %v678_v32  ;;  %v661_v43 = vld [vmem:[#allocation10 + $0xe8] sm:$0xff] }
  0xa7   :  { %v1231_v9 = vpop.f32.mrf.mxu2  ;;  %v1235_v12 = vmul.f32 0.125, %v288_v62  ;;  %v304_v13 = vadd.f32 %v303_v4, %v302_v63  ;;  %v352_v18 = vadd.f32 %v351_v1, %v350_v53  ;;  %v367_v22 = vrot.slane %v366_v5, 2  ;;  %825 = vmatpush.msra.mxu3 %v694_v37  ;;  %786 = vmatpush.msra.mxu1 %v661_v43  ;;  %v693_v53 = vld [vmem:[#allocation10 + $0x1e8] sm:$0xff]  ;;  %v643_v1 = vld [vmem:[#allocation10 + $0x58] sm:$0xff]  ;;  %v1266_v16 = vpop.f32.mrf.mxu3  ;;  %v640_v43 = vld [vmem:[#allocation10 + $0x40] sm:$0xff] }
  0xa8   :  { %v293_v54 = vrot.slane %v292_v46, 1  ;;  %v356_v55 = vadd.f32 %v355_v47, %v354_v42  ;;  %v299_v59 = vrot.slane %v298_v48, 1  ;;  %v362_v60 = vadd.f32 %v361_v49, %v360_v44  ;;  %v645_v42 = vld [vmem:[#allocation10 + $0x68] sm:$0xff] }
  0xa9   :  { %v305_v24 = vrot.slane %v304_v13, 1  ;;  %v307_v25 = vrot.slane %v1229_v8, 4  ;;  %v338_v26 = vmul.f32 %v1229_v8, %v1229_v8  ;;  %v313_v29 = vrot.slane %v1231_v9, 4  ;;  %v677_v44 = vld [vmem:[#allocation10 + $0x168] sm:$0xff]  ;;  %766 = vmatpush.msra.mxu0 %v645_v42  ;;  %826 = vmatpush.msra.mxu3 %v693_v53 }
  0xaa   :  { %v294_v2 = vadd.f32 %v293_v54, %v292_v46  ;;  %v357_v3 = vrot.slane %v356_v55, 1  ;;  %v300_v6 = vadd.f32 %v299_v59, %v298_v48  ;;  %v363_v7 = vrot.slane %v362_v60, 1  ;;  %806 = vmatpush.msra.mxu2 %v677_v44  ;;  %v644_v54 = vld [vmem:[#allocation10 + $0x60] sm:$0xff]  ;;  %v641_v32 = vld [vmem:[#allocation10 + $0x48] sm:$0xff] }
  0xab   :  { %v368_v35 = vadd.f32 %v367_v22, %v366_v5  ;;  %v1247_v36 = vmul.f32 %v1231_v9, %v1231_v9  ;;  %v306_v38 = vadd.f32 %v305_v24, %v304_v13  ;;  %v308_v39 = vadd.f32 %v307_v25, %v1229_v8  ;;  %767 = vmatpush.msra.mxu0 %v644_v54  ;;  %v674_v22 = vld [vmem:[#allocation10 + $0x150] sm:$0xff]  ;;  %v656_v44 = vld [vmem:[#allocation10 + $0xc0] sm:$0xff] }
  0xac   :  { %v1237_v19 = vmul.f32 0.125, %v294_v2  ;;  %v358_v21 = vadd.f32 %v357_v3, %v356_v55  ;;  %v1243_v33 = vmul.f32 0.125, %v300_v6  ;;  %v364_v34 = vadd.f32 %v363_v7, %v362_v60  ;;  %v660_v55 = vld [vmem:[#allocation10 + $0xe0] sm:$0xff]  ;;  %v659_v2 = vld [vmem:[#allocation10 + $0xd8] sm:$0xff]  ;;  %827 = vmatpush.msra.mxu3 %v692_v61 }
  0xad   :  { %v371_v40 = vrot.slane %v338_v26, 4  ;;  %v314_v41 = vadd.f32 %v313_v29, %v1231_v9  ;;  %v282_v45 = vadd.f32 %v281_v10, %v280_v58  ;;  %v345_v46 = vrot.slane %v1233_v11, 1  ;;  %v676_v60 = vld [vmem:[#allocation10 + $0x160] sm:$0xff]  ;;  %787 = vmatpush.msra.mxu1 %v660_v55  ;;  %v675_v6 = vld [vmem:[#allocation10 + $0x158] sm:$0xff]  ;;  %768 = vmatpush.msra.mxu0 %v643_v1  ;;  %v690_v29 = vld [vmem:[#allocation10 + $0x1d0] sm:$0xff] }
  0xae   :  { %v369_v47 = vrot.slane %v368_v35, 1  ;;  %v1252_v48 = vmul.f32 0.125, %v306_v38  ;;  %v309_v49 = vrot.slane %v308_v39, 2  ;;  %v390_v56 = vmul.f32 0.125, %v352_v18  ;;  %807 = vmatpush.msra.mxu2 %v676_v60  ;;  %v691_v7 = vld [vmem:[#allocation10 + $0x1d8] sm:$0xff]  ;;  %v642_v18 = vld [vmem:[#allocation10 + $0x50] sm:$0xff] }
  0xaf   :  { %v372_v51 = vadd.f32 %v371_v40, %v338_v26  ;;  %v315_v52 = vrot.slane %v314_v41, 2  ;;  %v398_v57 = vmul.f32 %v1235_v12, %v1235_v12  ;;  %v391_v59 = vmul.f32 0.125, %v358_v21  ;;  %788 = vmatpush.msra.mxu1 %v659_v2  ;;  %v658_v21 = vld [vmem:[#allocation10 + $0xd0] sm:$0xff]  ;;  %828 = vmatpush.msra.mxu3 %v691_v7  ;;  %v671_v61 = vld [vmem:[#allocation10 + $0x138] sm:$0xff] }
  0xb0   :  { %v399_v58 = vmul.f32 %v1237_v19, %v1237_v19  ;;  %v392_v62 = vmul.f32 0.125, %v364_v34  ;;  %v400_v63 = vmul.f32 %v1243_v33, %v1243_v33  ;;  %v377_v0 = vrot.slane %v1247_v36, 4  ;;  %808 = vmatpush.msra.mxu2 %v675_v6  ;;  %769 = vmatpush.msra.mxu0 %v642_v18  ;;  %v657_v34 = vld [vmem:[#allocation10 + $0xc8] sm:$0xff]  ;;  %v638_v1 = vld [vmem:[#allocation10 + $0x30] sm:$0xff] }
  0xb1   :  { %v370_v3 = vadd.f32 %v369_v47, %v368_v35  ;;  %v401_v4 = vmul.f32 %v1252_v48, %v1252_v48  ;;  %v310_v5 = vadd.f32 %v309_v49, %v308_v39  ;;  %v1263_v10 = vmul.f32 0.125, %v282_v45  ;;  %789 = vmatpush.msra.mxu1 %v658_v21  ;;  %v673_v35 = vld [vmem:[#allocation10 + $0x148] sm:$0xff]  ;;  %829 = vmatpush.msra.mxu3 %v690_v29  ;;  %v672_v45 = vld [vmem:[#allocation10 + $0x140] sm:$0xff]  ;;  %v654_v2 = vld [vmem:[#allocation10 + $0xb0] sm:$0xff] }
  0xb2   :  { %v346_v13 = vadd.f32 %v345_v46, %v1233_v11  ;;  %v373_v14 = vrot.slane %v372_v51, 2  ;;  %v316_v15 = vadd.f32 %v315_v52, %v314_v41  ;;  %v406_v23 = vsub.f32 %v390_v56, %v398_v57  ;;  %809 = vmatpush.msra.mxu2 %v674_v22  ;;  %v689_v41 = vld [vmem:[#allocation10 + $0x1c8] sm:$0xff]  ;;  %770 = vmatpush.msra.mxu0 %v641_v32  ;;  %v639_v56 = vld [vmem:[#allocation10 + $0x38] sm:$0xff]  ;;  %v686_v6 = vld [vmem:[#allocation10 + $0x1b0] sm:$0xff] }
  0xb3   :  { %v407_v24 = vsub.f32 %v391_v59, %v399_v58  ;;  %v393_v25 = vmul.f32 0.125, %v370_v3  ;;  %v311_v26 = vrot.slane %v310_v5, 1  ;;  %v408_v30 = vsub.f32 %v392_v62, %v400_v63  ;;  %790 = vmatpush.msra.mxu1 %v657_v34  ;;  %830 = vmatpush.msra.mxu3 %v689_v41  ;;  %v655_v57 = vld [vmem:[#allocation10 + $0xb8] sm:$0xff]  ;;  %v670_v3 = vld [vmem:[#allocation10 + $0x130] sm:$0xff]  ;;  %v637_v18 = vld [vmem:[#allocation10 + $0x28] sm:$0xff] }
  0xb4   :  { %v374_v31 = vadd.f32 %v373_v14, %v372_v51  ;;  %v378_v11 = vadd.f32 %v377_v0, %v1247_v36  ;;  %v317_v39 = vrot.slane %v316_v15, 1  ;;  %v319_v40 = vrot.slane %v1266_v16, 4  ;;  %810 = vmatpush.msra.mxu2 %v673_v35  ;;  %v688_v51 = vld [vmem:[#allocation10 + $0x1c0] sm:$0xff]  ;;  %771 = vmatpush.msra.mxu0 %v640_v43  ;;  %v687_v62 = vld [vmem:[#allocation10 + $0x1b8] sm:$0xff]  ;;  %v653_v21 = vld [vmem:[#allocation10 + $0xa8] sm:$0xff] }
  0xb5   :  { %v409_v37 = vsub.f32 %v393_v25, %v401_v4  ;;  %v312_v38 = vadd.f32 %v311_v26, %v310_v5  ;;  %v1270_v36 = vmul.f32 0.125, %v346_v13  ;;  %v397_v46 = vmul.f32 %v1263_v10, %v1263_v10  ;;  %791 = vmatpush.msra.mxu1 %v656_v44  ;;  %831 = vmatpush.msra.mxu3 %v688_v51  ;;  %v669_v22 = vld [vmem:[#allocation10 + $0x128] sm:$0xff]  ;;  %v652_v32 = vld [vmem:[#allocation10 + $0xa0] sm:$0xff]  ;;  %v651_v43 = vld [vmem:[#allocation10 + $0x98] sm:$0xff] }
  0xb6   :  { %v375_v42 = vrot.slane %v374_v31, 1  ;;  %v414_v47 = vmax.f32 %v406_v23, 0.0  ;;  %v415_v49 = vmax.f32 %v407_v24, 0.0  ;;  %v416_v52 = vmax.f32 %v408_v30, 0.0  ;;  %811 = vmatpush.msra.mxu2 %v672_v45  ;;  %772 = vmatpush.msra.mxu0 %v639_v56  ;;  %v685_v29 = vld [vmem:[#allocation10 + $0x1a8] sm:$0xff]  ;;  %v668_v34 = vld [vmem:[#allocation10 + $0x120] sm:$0xff] }
  0xb7   :  { %v1274_v53 = vmul.f32 0.125, %v312_v38  ;;  %v379_v55 = vrot.slane %v378_v11, 2  ;;  %v417_v59 = vmax.f32 %v409_v37, 0.0  ;;  %v318_v58 = vadd.f32 %v317_v39, %v316_v15  ;;  %792 = vmatpush.msra.mxu1 %v655_v57  ;;  %832 = vmatpush.msra.mxu3 %v687_v62  ;;  %v684_v38 = vld [vmem:[#allocation10 + $0x1a0] sm:$0xff]  ;;  %v667_v44 = vld [vmem:[#allocation10 + $0x118] sm:$0xff]  ;;  %v650_v51 = vld [vmem:[#allocation10 + $0x90] sm:$0xff] }
  0xb8   :  { %v376_v54 = vadd.f32 %v375_v42, %v374_v31  ;;  %v320_v60 = vadd.f32 %v319_v40, %v1266_v16  ;;  %v1279_v4 = vadd.f32 1e-05, %v414_v47  ;;  %v1281_v5 = vadd.f32 1e-05, %v415_v49  ;;  %812 = vmatpush.msra.mxu2 %v671_v61  ;;  %773 = vmatpush.msra.mxu0 %v638_v1  ;;  %v635_v42 = vld [vmem:[#allocation10 + $0x18] sm:$0xff]  ;;  %v634_v49 = vld [vmem:[#allocation10 + $0x10] sm:$0xff] }
  0xb9   :  { %v402_v0 = vmul.f32 %v1274_v53, %v1274_v53  ;;  %v405_v7 = vsub.f32 %v1270_v36, %v397_v46  ;;  %v1284_v13 = vadd.f32 1e-05, %v416_v52  ;;  %v380_v15 = vadd.f32 %v379_v55, %v378_v11  ;;  %793 = vmatpush.msra.mxu1 %v654_v2  ;;  %833 = vmatpush.msra.mxu3 %v686_v6  ;;  %v636_v11 = vld [vmem:[#allocation10 + $0x20] sm:$0xff]  ;;  %v683_v47 = vld [vmem:[#allocation10 + $0x198] sm:$0xff]  ;;  %v666_v52 = vld [vmem:[#allocation10 + $0x110] sm:$0xff] }
  0xba   :  { %v394_v63 = vmul.f32 0.125, %v376_v54  ;;  %v1286_v23 = vadd.f32 1e-05, %v417_v59  ;;  %v1288_v24 = vmul.f32 0.125, %v318_v58  ;;  %v321_v25 = vrot.slane %v320_v60, 2  ;;  %813 = vmatpush.msra.mxu2 %v670_v3  ;;  %774 = vmatpush.msra.mxu0 %v637_v18  ;;  %v682_v57 = vld [vmem:[#allocation10 + $0x190] sm:$0xff] }
  0xbb   :  { %v340_v26 = vmul.f32 %v1266_v16, %v1266_v16  ;;  %v381_v31 = vrot.slane %v380_v15, 1  ;;  %794 = vmatpush.msra.mxu1 %v653_v21  ;;  %963 = vrsqrt.f32 %v1279_v4  ;;  %834 = vmatpush.msra.mxu3 %v685_v29  ;;  %v413_v39 = vmax.f32 %v405_v7, 0.0  ;;  %v633_v58 = vld [vmem:[#allocation10 + $0x8] sm:$0xff]  ;;  %v632_v6 = vld [vmem:[#allocation10] sm:$0xff] }
  0xbc   :  { %v410_v14 = vsub.f32 %v394_v63, %v402_v0  ;;  %v322_v35 = vadd.f32 %v321_v25, %v320_v60  ;;  %814 = vmatpush.msra.mxu2 %v669_v22  ;;  %965 = vrsqrt.f32 %v1281_v5  ;;  %775 = vmatpush.msra.mxu0 %v636_v11  ;;  %v403_v45 = vmul.f32 %v1288_v24, %v1288_v24  ;;  %v649_v60 = vld [vmem:[#allocation10 + $0x88] sm:$0xff]  ;;  %v648_v7 = vld [vmem:[#allocation10 + $0x80] sm:$0xff]  ;;  %v711_v25 = vld [vmem:[#allocation10 + $0x278] sm:$0xff] }
  0xbd   :  { %v383_v37 = vrot.slane %v340_v26, 4  ;;  %v382_v41 = vadd.f32 %v381_v31, %v380_v15  ;;  %795 = vmatpush.msra.mxu1 %v652_v32  ;;  %967 = vrsqrt.f32 %v1284_v13  ;;  %835 = vmatpush.msra.mxu3 %v684_v38  ;;  %v1301_v59 = vadd.f32 1e-05, %v413_v39  ;;  %v665_v61 = vld [vmem:[#allocation10 + $0x108] sm:$0xff]  ;;  %v680_v22 = vld [vmem:[#allocation10 + $0x180] sm:$0xff]  ;;  %v759_v31 = vld [vmem:[#allocation10 + $0x3f8] sm:$0xff] }
  0xbe   :  { %v418_v30 = vmax.f32 %v410_v14, 0.0  ;;  %v323_v36 = vrot.slane %v322_v35, 1  ;;  %815 = vmatpush.msra.mxu2 %v668_v34  ;;  %969 = vrsqrt.f32 %v1286_v23  ;;  %776 = vmatpush.msra.mxu0 %v635_v42  ;;  %v681_v2 = vld [vmem:[#allocation10 + $0x188] sm:$0xff]  ;;  %v664_v14 = vld [vmem:[#allocation10 + $0x100] sm:$0xff]  ;;  %v726_v38 = vld [vmem:[#allocation10 + $0x2f0] sm:$0xff]  ;;  %vm446_vm2 = vweird.f32 %v1279_v4 }
  0xbf   :  { %v384_v46 = vadd.f32 %v383_v37, %v340_v26  ;;  %796 = vmatpush.msra.mxu1 %v651_v43  ;;  %v395_v54 = vmul.f32 0.125, %v382_v41  ;;  %836 = vmatpush.msra.mxu3 %v683_v47  ;;  %v727_v26 = vld [vmem:[#allocation10 + $0x2f8] sm:$0xff]  ;;  %v710_v37 = vld [vmem:[#allocation10 + $0x270] sm:$0xff]  ;;  %v725_v47 = vld [vmem:[#allocation10 + $0x2e8] sm:$0xff]  ;;  %vm456_vm4 = vweird.f32 %v1281_v5  ;;  %vm466_vm5 = vweird.f32 %v1284_v13 }
  0xc0   :  { %v1294_v40 = vadd.f32 1e-05, %v418_v30  ;;  %v324_v55 = vadd.f32 %v323_v36, %v322_v35  ;;  %816 = vmatpush.msra.mxu2 %v667_v44  ;;  %777 = vmatpush.msra.mxu0 %v634_v49  ;;  %v743_v30 = vld [vmem:[#allocation10 + $0x378] sm:$0xff]  ;;  %v742_v42 = vld [vmem:[#allocation10 + $0x370] sm:$0xff]  ;;  %vm476_vm10 = vweird.f32 %v1286_v23 }
  0xc1   :  { %v385_v56 = vrot.slane %v384_v46, 2  ;;  %797 = vmatpush.msra.mxu1 %v650_v51  ;;  %v1303_v62 = vpop.eup %963  ;;  %v411_v63 = vsub.f32 %v395_v54, %v403_v45  ;;  %837 = vmatpush.msra.mxu3 %v682_v57  ;;  %v758_v43 = vld [vmem:[#allocation10 + $0x3f0] sm:$0xff]  ;;  %v741_v51 = vld [vmem:[#allocation10 + $0x368] sm:$0xff] }
  0xc2   :  { %971 = vrsqrt.f32 %v1294_v40  ;;  %v1305_v0 = vmul.f32 0.125, %v324_v55  ;;  %817 = vmatpush.msra.mxu2 %v666_v52  ;;  %v1307_v3 = vpop.eup %965  ;;  %778 = vmatpush.msra.mxu0 %v633_v58  ;;  %v441_v44 = vmul.f32 %v1303_v62, %v1279_v4  ;;  %v757_v52 = vld [vmem:[#allocation10 + $0x3e8] sm:$0xff]  ;;  %v708_v55 = vld [vmem:[#allocation10 + $0x260] sm:$0xff]  ;;  %vm447_vm1 = vweird.f32 %v1303_v62 }
  0xc3   :  { %v386_v1 = vadd.f32 %v385_v56, %v384_v46  ;;  %798 = vmatpush.msra.mxu1 %v649_v60  ;;  %v1309_v15 = vpop.eup %967  ;;  %v419_v18 = vmax.f32 %v411_v63, 0.0  ;;  %838 = vmatpush.msra.mxu3 %v681_v2  ;;  %973 = vrsqrt.f32 %v1301_v59  ;;  %v451_v39 = vmul.f32 %v1307_v3, %v1281_v5  ;;  %v709_v46 = vld [vmem:[#allocation10 + $0x268] sm:$0xff]  ;;  %v724_v56 = vld [vmem:[#allocation10 + $0x2e0] sm:$0xff]  ;;  %vm1363_vm7 = vmor %vm446_vm2, %vm447_vm1 }
  0xc4   :  { %818 = vmatpush.msra.mxu2 %v665_v61  ;;  %v1311_v29 = vpop.eup %969  ;;  %779 = vmatpush.msra.mxu0 %v632_v6  ;;  %v404_v35 = vmul.f32 %v1305_v0, %v1305_v0  ;;  %v461_v41 = vmul.f32 %v1309_v15, %v1284_v13  ;;  %v740_v61 = vld [vmem:[#allocation10 + $0x360] sm:$0xff]  ;;  %vm457_vm3 = vweird.f32 %v1307_v3  ;;  %vm467_vm6 = vweird.f32 %v1309_v15 }
  0xc5   :  { %v387_v21 = vrot.slane %v386_v1, 1  ;;  %799 = vmatpush.msra.mxu1 %v648_v7  ;;  %v1316_v32 = vadd.f32 1e-05, %v419_v18  ;;  %839 = vmatpush.msra.mxu3 %v680_v22  ;;  %v471_v45 = vmul.f32 %v1311_v29, %v1286_v23  ;;  %v452_v58 = vmul.f32 %v1307_v3, %v451_v39  ;;  %v756_v63 = vld [vmem:[#allocation10 + $0x3e0] sm:$0xff]  ;;  %v707_v7 = vld [vmem:[#allocation10 + $0x258] sm:$0xff]  ;;  %v738_v39 = vld [vmem:[#allocation10 + $0x350] sm:$0xff] }
  0xc6   :  { %819 = vmatpush.msra.mxu2 %v664_v14  ;;  %844 = vmatpush.msrb.mxu0 %v711_v25  ;;  %v462_v60 = vmul.f32 %v1309_v15, %v461_v41  ;;  %v723_v14 = vld [vmem:[#allocation10 + $0x2d8] sm:$0xff]  ;;  %v754_v41 = vld [vmem:[#allocation10 + $0x3d0] sm:$0xff]  ;;  %vm477_vm8 = vweird.f32 %v1311_v29  ;;  %vm1379_vm9 = vmor %vm456_vm4, %vm457_vm3  ;;  %vm486_vm15 = vweird.f32 %v1294_v40  ;;  %vm436_vm4 = vweird.f32 %v1301_v59 }
  0xc7   :  { %v388_v34 = vadd.f32 %v387_v21, %v386_v1  ;;  %864 = vmatpush.msrb.mxu1 %v727_v26  ;;  %975 = vrsqrt.f32 %v1316_v32  ;;  %904 = vmatpush.msrb.mxu3 %v759_v31  ;;  %v442_v1 = vmul.f32 %v1303_v62, %v441_v44  ;;  %v472_v2 = vmul.f32 %v1311_v29, %v471_v45  ;;  %v739_v21 = vld [vmem:[#allocation10 + $0x358] sm:$0xff]  ;;  %v706_v31 = vld [vmem:[#allocation10 + $0x250] sm:$0xff]  ;;  %v705_v44 = vld [vmem:[#allocation10 + $0x248] sm:$0xff] }
  0xc8   :  { %v1314_v11 = vpop.eup %971  ;;  %884 = vmatpush.msrb.mxu2 %v743_v30  ;;  %845 = vmatpush.msrb.mxu0 %v710_v37  ;;  %v755_v22 = vld [vmem:[#allocation10 + $0x3d8] sm:$0xff]  ;;  %v463_v37 = vmul.f32 0.5, %v462_v60  ;;  %v721_v45 = vld [vmem:[#allocation10 + $0x2c8] sm:$0xff]  ;;  %v736_v60 = vld [vmem:[#allocation10 + $0x340] sm:$0xff]  ;;  %vm496_vm1 = vweird.f32 %v1316_v32 }
  0xc9   :  { %v396_v36 = vmul.f32 0.125, %v388_v34  ;;  %v481_v49 = vmul.f32 %v1314_v11, %v1294_v40  ;;  %865 = vmatpush.msrb.mxu1 %v726_v38  ;;  %905 = vmatpush.msrb.mxu3 %v758_v43  ;;  %v1331_v57 = vpop.eup %973  ;;  %v722_v34 = vld [vmem:[#allocation10 + $0x2d0] sm:$0xff]  ;;  %v473_v43 = vmul.f32 0.5, %v472_v2  ;;  %v703_v2 = vld [vmem:[#allocation10 + $0x238] sm:$0xff]  ;;  %vm487_vm11 = vweird.f32 %v1314_v11  ;;  %vm1392_vm12 = vmor %vm466_vm5, %vm467_vm6 }
  0xca   :  { %885 = vmatpush.msrb.mxu2 %v742_v42  ;;  %846 = vmatpush.msrb.mxu0 %v709_v46  ;;  %v431_v26 = vmul.f32 %v1331_v57, %v1301_v59  ;;  %v443_v42 = vmul.f32 0.5, %v442_v1  ;;  %vm1405_vm14 = vmor %vm476_vm10, %vm477_vm8  ;;  %vm437_vm5 = vweird.f32 %v1331_v57  ;;  %vm531_vm10 = vcmask 1044484   ;;  %v728_v59 = vld [vmem:[#allocation10 + $0x300] sm:$0xff] }
  0xcb   :  { %v412_v54 = vsub.f32 %v396_v36, %v404_v35  ;;  %866 = vmatpush.msrb.mxu1 %v725_v47  ;;  %906 = vmatpush.msrb.mxu3 %v757_v52  ;;  %v482_v18 = vmul.f32 %v1314_v11, %v481_v49  ;;  %v453_v35 = vmul.f32 0.5, %v452_v58  ;;  %v737_v47 = vld [vmem:[#allocation10 + $0x348] sm:$0xff]  ;;  %v704_v52 = vld [vmem:[#allocation10 + $0x240] sm:$0xff]  ;;  %v474_v1 = vsub.f32 1.5, %v473_v43  ;;  %vm1418_vm0 = vmor %vm486_vm15, %vm487_vm11 }
  0xcc   :  { %886 = vmatpush.msrb.mxu2 %v741_v51  ;;  %847 = vmatpush.msrb.mxu0 %v708_v55  ;;  %v753_v49 = vld [vmem:[#allocation10 + $0x3c8] sm:$0xff]  ;;  %v432_v51 = vmul.f32 %v1331_v57, %v431_v26  ;;  %vm533_vm11 = vcmask 1046534   ;;  %vm537_vm15 = vcmask 1043456  }
  0xcd   :  { %v420_v6 = vmax.f32 %v412_v54, 0.0  ;;  %867 = vmatpush.msrb.mxu1 %v724_v56  ;;  %v1338_v25 = vpop.eup %975  ;;  %907 = vmatpush.msrb.mxu3 %v756_v63  ;;  %v483_v36 = vmul.f32 0.5, %v482_v18  ;;  %v720_v54 = vld [vmem:[#allocation10 + $0x2c0] sm:$0xff]  ;;  %v454_v55 = vsub.f32 1.5, %v453_v35  ;;  %v464_v56 = vsub.f32 1.5, %v463_v37  ;;  %v735_v18 = vld [vmem:[#allocation10 + $0x338] sm:$0xff] }
  0xce   :  { %887 = vmatpush.msrb.mxu2 %v740_v61  ;;  %v491_v38 = vmul.f32 %v1338_v25, %v1316_v32  ;;  %848 = vmatpush.msrb.mxu0 %v707_v7  ;;  %v752_v61 = vld [vmem:[#allocation10 + $0x3c0] sm:$0xff]  ;;  %v444_v63 = vsub.f32 1.5, %v443_v42  ;;  %v1354_v26 = vmul.f32 0.5, %v432_v51  ;;  %v750_v42 = vld [vmem:[#allocation10 + $0x3b0] sm:$0xff]  ;;  %vm497_vm13 = vweird.f32 %v1338_v25  ;;  %v733_v51 = vld [vmem:[#allocation10 + $0x328] sm:$0xff] }
  0xcf   :  { %v1342_v30 = vadd.f32 1e-05, %v420_v6  ;;  %868 = vmatpush.msrb.mxu1 %v723_v14  ;;  %908 = vmatpush.msrb.mxu3 %v755_v22  ;;  %v719_v6 = vld [vmem:[#allocation10 + $0x2b8] sm:$0xff]  ;;  %v484_v7 = vsub.f32 1.5, %v483_v36  ;;  %v455_v37 = vmul.f32 %v1307_v3, %v454_v55  ;;  %v717_v36 = vld [vmem:[#allocation10 + $0x2a8] sm:$0xff]  ;;  %v700_v55 = vld [vmem:[#allocation10 + $0x220] sm:$0xff] }
  0xd0   :  { %888 = vmatpush.msrb.mxu2 %v739_v21  ;;  %v492_v46 = vmul.f32 %v1338_v25, %v491_v38  ;;  %849 = vmatpush.msrb.mxu0 %v706_v31  ;;  %v751_v21 = vld [vmem:[#allocation10 + $0x3b8] sm:$0xff]  ;;  %v702_v31 = vld [vmem:[#allocation10 + $0x230] sm:$0xff]  ;;  %v465_v38 = vmul.f32 %v1309_v15, %v464_v56  ;;  %v1373_v43 = vmul.f32 %v1303_v62, %v444_v63  ;;  %v716_v56 = vld [vmem:[#allocation10 + $0x2a0] sm:$0xff] }
  0xd1   :  { %977 = vrsqrt.f32 %v1342_v30  ;;  %869 = vmatpush.msrb.mxu1 %v722_v34  ;;  %909 = vmatpush.msrb.mxu3 %v754_v41  ;;  %v718_v34 = vld [vmem:[#allocation10 + $0x2b0] sm:$0xff]  ;;  %v748_v63 = vld [vmem:[#allocation10 + $0x3a0] sm:$0xff]  ;;  %vm1433_vm2 = vmor %vm496_vm1, %vm497_vm13  ;;  %vm506_vm6 = vweird.f32 %v1342_v30  ;;  %vm529_vm13 = vcmask 1041408  }
  0xd2   :  { %889 = vmatpush.msrb.mxu2 %v738_v39  ;;  %v493_v58 = vmul.f32 0.5, %v492_v46  ;;  %850 = vmatpush.msrb.mxu0 %v705_v44  ;;  %v734_v41 = vld [vmem:[#allocation10 + $0x330] sm:$0xff]  ;;  %v1384_v44 = vmul.f32 %v1311_v29, %v474_v1  ;;  %v485_v46 = vmul.f32 %v1314_v11, %v484_v7  ;;  %v699_v32 = vld [vmem:[#allocation10 + $0x218] sm:$0xff] }
  0xd3   :  { %870 = vmatpush.msrb.mxu1 %v721_v45  ;;  %910 = vmatpush.msrb.mxu3 %v753_v49  ;;  %v701_v45 = vld [vmem:[#allocation10 + $0x228] sm:$0xff]  ;;  %v746_v35 = vld [vmem:[#allocation10 + $0x390] sm:$0xff] }
  0xd4   :  { %890 = vmatpush.msrb.mxu2 %v737_v47  ;;  %v494_v14 = vsub.f32 1.5, %v493_v58  ;;  %851 = vmatpush.msrb.mxu0 %v704_v52  ;;  %v749_v52 = vld [vmem:[#allocation10 + $0x3a8] sm:$0xff]  ;;  %v459_v58 = vsel %vm1379_vm9, %v1307_v3, %v455_v37  ;;  %v449_v3 = vsel %vm1363_vm7, %v1303_v62, %v1373_v43  ;;  %vm527_vm7 = vcmask 1042434  }
  0xd5   :  { %871 = vmatpush.msrb.mxu1 %v720_v54  ;;  %911 = vmatpush.msrb.mxu3 %v752_v61  ;;  %v434_v54 = vsub.f32 1.5, %v1354_v26  ;;  %v732_v61 = vld [vmem:[#allocation10 + $0x320] sm:$0xff]  ;;  %v714_v26 = vld [vmem:[#allocation10 + $0x290] sm:$0xff]  ;;  %v518_v37 = vrot.slane %v449_v3, 7  ;;  %v713_v43 = vld [vmem:[#allocation10 + $0x288] sm:$0xff]  ;;  %vm525_vm9 = vcmask 1040384  }
  0xd6   :  { %891 = vmatpush.msrb.mxu2 %v736_v60  ;;  %852 = vmatpush.msrb.mxu0 %v703_v2  ;;  %v495_v47 = vmul.f32 %v1338_v25, %v494_v14  ;;  %v469_v60 = vsel %vm1392_vm12, %v1309_v15, %v465_v38  ;;  %v479_v15 = vsel %vm1405_vm14, %v1311_v29, %v1384_v44  ;;  %v715_v2 = vld [vmem:[#allocation10 + $0x298] sm:$0xff]  ;;  %v745_v44 = vld [vmem:[#allocation10 + $0x388] sm:$0xff]  ;;  %vm1456_vm12 = vmor %vm436_vm4, %vm437_vm5  ;;  %vm535_vm14 = vcmask 1045508  }
  0xd7   :  { %v1352_v22 = vpop.eup %977  ;;  %872 = vmatpush.msrb.mxu1 %v719_v6  ;;  %912 = vmatpush.msrb.mxu3 %v751_v21  ;;  %v489_v6 = vsel %vm1418_vm0, %v1314_v11, %v485_v46  ;;  %v731_v29 = vld [vmem:[#allocation10 + $0x318] sm:$0xff]  ;;  %v520_v21 = vrot.slane %v469_v60, 5  ;;  %v698_v11 = vld [vmem:[#allocation10 + $0x210] sm:$0xff]  ;;  %v521_v38 = vrot.slane %v479_v15, 4  ;;  %v712_v46 = vld [vmem:[#allocation10 + $0x280] sm:$0xff] }
  0xd8   :  { %v501_v39 = vmul.f32 %v1352_v22, %v1342_v30  ;;  %892 = vmatpush.msrb.mxu2 %v735_v18  ;;  %853 = vmatpush.msrb.mxu0 %v702_v31  ;;  %v499_v62 = vsel %vm1433_vm2, %v1338_v25, %v495_v47  ;;  %vm507_vm3 = vweird.f32 %v1352_v22  ;;  %v747_v14 = vld [vmem:[#allocation10 + $0x398] sm:$0xff]  ;;  %v519_v18 = vrot.slane %v459_v58, 6  ;;  %v729_v30 = vld [vmem:[#allocation10 + $0x308] sm:$0xff] }
  0xd9   :  { %873 = vmatpush.msrb.mxu1 %v718_v34  ;;  %913 = vmatpush.msrb.mxu3 %v750_v42  ;;  %v435_v31 = vmul.f32 %v1331_v57, %v434_v54  ;;  %v730_v34 = vld [vmem:[#allocation10 + $0x310] sm:$0xff]  ;;  %vm508_vm8 = vmor %vm506_vm6, %vm507_vm3  ;;  %v697_v42 = vld [vmem:[#allocation10 + $0x208] sm:$0xff] }
  0xda   :  { %v502_v49 = vmul.f32 %v1352_v22, %v501_v39  ;;  %893 = vmatpush.msrb.mxu2 %v734_v41  ;;  %854 = vmatpush.msrb.mxu0 %v701_v45  ;;  %v522_v39 = vrot.slane %v489_v6, 3  ;;  %v523_v41 = vrot.slane %v499_v62, 2  ;;  %v528_v5 = vsel %vm527_vm7, %v519_v18, %v520_v21 }
  0xdb   :  { %874 = vmatpush.msrb.mxu1 %v717_v36  ;;  %914 = vmatpush.msrb.mxu3 %v749_v52  ;;  %v439_v47 = vsel %vm1456_vm12, %v1331_v57, %v435_v31 }
  0xdc   :  { %v503_v40 = vmul.f32 0.5, %v502_v49  ;;  %894 = vmatpush.msrb.mxu2 %v733_v51  ;;  %855 = vmatpush.msrb.mxu0 %v700_v55  ;;  %v744_v49 = vld [vmem:[#allocation10 + $0x380] sm:$0xff]  ;;  %v421_v51 = vld [vmem:[#allocation7] sm:$0xff]  ;;  %v526_v52 = vsel %vm525_vm9, %v439_v47, %v518_v37  ;;  %v532_v54 = vsel %vm531_vm10, %v521_v38, %v522_v39 }
  0xdd   :  { %875 = vmatpush.msrb.mxu1 %v716_v56  ;;  %915 = vmatpush.msrb.mxu3 %v748_v63  ;;  %v530_v55 = vsel %vm529_vm13, %v526_v52, %v528_v5 }
  0xde   :  { %v504_v7 = vsub.f32 1.5, %v503_v40  ;;  %895 = vmatpush.msrb.mxu2 %v732_v61  ;;  %856 = vmatpush.msrb.mxu0 %v699_v32 }
  0xdf   :  { %876 = vmatpush.msrb.mxu1 %v715_v2  ;;  %916 = vmatpush.msrb.mxu3 %v747_v14 }
  0xe0   :  { %v505_v25 = vmul.f32 %v1352_v22, %v504_v7  ;;  %896 = vmatpush.msrb.mxu2 %v731_v29  ;;  %857 = vmatpush.msrb.mxu0 %v698_v11 }
  0xe1   :  { %877 = vmatpush.msrb.mxu1 %v714_v26  ;;  %917 = vmatpush.msrb.mxu3 %v746_v35 }
  0xe2   :  { %v509_v4 = vsel %vm508_vm8, %v1352_v22, %v505_v25  ;;  %897 = vmatpush.msrb.mxu2 %v730_v34  ;;  %v696_v22 = vld [vmem:[#allocation10 + $0x200] sm:$0xff]  ;;  %858 = vmatpush.msrb.mxu0 %v697_v42 }
  0xe3   :  { %v524_v36 = vrot.slane %v509_v4, 1  ;;  %878 = vmatpush.msrb.mxu1 %v713_v43  ;;  %918 = vmatpush.msrb.mxu3 %v745_v44 }
  0xe4   :  { %898 = vmatpush.msrb.mxu2 %v729_v30  ;;  %859 = vmatpush.msrb.mxu0 %v696_v22 }
  0xe5   :  { %v534_v13 = vsel %vm533_vm11, %v523_v41, %v524_v36  ;;  %879 = vmatpush.msrb.mxu1 %v712_v46  ;;  %919 = vmatpush.msrb.mxu3 %v744_v49 }
  0xe6   :  { %v536_v56 = vsel %vm535_vm14, %v532_v54, %v534_v13  ;;  %899 = vmatpush.msrb.mxu2 %v728_v59 }
  0xe7   :  { %v538_v57 = vsel %vm537_vm15, %v530_v55, %v536_v56 }
  0xe8   :  { %v540_v58 = vmul.f32 %v538_v57, %v421_v51 }
  0xea   :  { %v543_v60 = vperm.slane %v540_v58, 0  ;;  %v544_v23 = vperm.slane %v540_v58, 1  ;;  %v545_v40 = vperm.slane %v540_v58, 2  ;;  %v546_v61 = vperm.slane %v540_v58, 3 }
  0xeb   :  { %v547_v63 = vperm.slane %v540_v58, 4  ;;  %v548_v3 = vperm.slane %v540_v58, 5  ;;  %v549_v15 = vperm.slane %v540_v58, 6  ;;  %v550_v1 = vperm.slane %v540_v58, 7 }
  0xec   :  { %v560_v32 = vmul.f32 %v544_v23, %v1235_v12  ;;  %v561_v2 = vmul.f32 %v545_v40, %v1237_v19  ;;  %v562_v6 = vmul.f32 %v546_v61, %v1243_v33  ;;  %v559_v18 = vmul.f32 %v543_v60, %v1263_v10 }
  0xed   :  { %v563_v62 = vmul.f32 %v547_v63, %v1252_v48  ;;  %v564_v7 = vmul.f32 %v548_v3, %v1274_v53  ;;  %v565_v29 = vmul.f32 %v549_v15, %v1288_v24  ;;  %v566_v14 = vmul.f32 %v550_v1, %v1305_v0  ;;  %v541_v48 = vld [vmem:[#allocation8] sm:$0xff] }
  0xee   :  { %v575_v21 = vrot.slane %v560_v32, 7  ;;  %v576_v11 = vrot.slane %v561_v2, 6  ;;  %v577_v26 = vrot.slane %v562_v6, 5  ;;  %v591_v38 = vmul.f32 %v543_v60, %v1204_v20 }
  0xef   :  { %v578_v31 = vrot.slane %v563_v62, 4  ;;  %v579_v25 = vrot.slane %v564_v7, 3  ;;  %v580_v12 = vrot.slane %v565_v29, 2  ;;  %v581_v34 = vrot.slane %v566_v14, 1 }
  0xf0   :  { %v582_v19 = vsel %vm525_vm9, %v559_v18, %v575_v21  ;;  %v583_v33 = vsel %vm527_vm7, %v576_v11, %v577_v26  ;;  %v592_v39 = vmul.f32 %v544_v23, %v1199_v17  ;;  %v593_v43 = vmul.f32 %v545_v40, %v1210_v27 }
  0xf1   :  { %v584_v53 = vsel %vm529_vm13, %v582_v19, %v583_v33  ;;  %v585_v24 = vsel %vm531_vm10, %v578_v31, %v579_v25  ;;  %v586_v0 = vsel %vm533_vm11, %v580_v12, %v581_v34  ;;  %v594_v30 = vmul.f32 %v546_v61, %v1212_v28 }
  0xf2   :  { %v587_v10 = vsel %vm535_vm14, %v585_v24, %v586_v0  ;;  %v595_v27 = vmul.f32 %v547_v63, %v1223_v50  ;;  %v596_v54 = vmul.f32 %v548_v3, %v1229_v8  ;;  %v598_v28 = vmul.f32 %v550_v1, %v1266_v16  ;;  %v962_v50 = vld [vmem:[%s1504_s5] ss:$0 sm:$0xff] }
  0xf3   :  { %v588_v35 = vsel %vm537_vm15, %v584_v53, %v587_v10  ;;  %v597_v13 = vmul.f32 %v549_v15, %v1231_v9 }
  0xf4   :  { %v590_v37 = vsub.f32 %v541_v48, %v588_v35 }
  0xf6   :  { %v600_v41 = vperm.slane %v590_v37, 0  ;;  %v601_v42 = vperm.slane %v590_v37, 1  ;;  %v602_v4 = vperm.slane %v590_v37, 2  ;;  %v603_v44 = vperm.slane %v590_v37, 3 }
  0xf7   :  { %v604_v46 = vperm.slane %v590_v37, 4  ;;  %v605_v51 = vperm.slane %v590_v37, 5  ;;  %v607_v20 = vperm.slane %v590_v37, 7  ;;  %v606_v17 = vperm.slane %v590_v37, 6 }
  0xf8   :  { %v616_v45 = vadd.f32 %v600_v41, %v591_v38  ;;  %v617_v36 = vadd.f32 %v601_v42, %v592_v39  ;;  %v618_v5 = vadd.f32 %v602_v4, %v593_v43  ;;  %v619_v22 = vadd.f32 %v603_v44, %v594_v30 }
  0xf9   :  { %v620_v55 = vadd.f32 %v604_v46, %v595_v27  ;;  %v621_v56 = vadd.f32 %v605_v51, %v596_v54  ;;  %v623_v57 = vadd.f32 %v607_v20, %v598_v28  ;;  %v622_v58 = vadd.f32 %v606_v17, %v597_v13 }
  0xfa   :  { %v624_v47 = vmax.f32 %v616_v45, 0.0  ;;  %v625_v59 = vmax.f32 %v617_v36, 0.0  ;;  %v626_v49 = vmax.f32 %v618_v5, 0.0  ;;  %v627_v52 = vmax.f32 %v619_v22, 0.0 }
  0xfb   :  { %v628_v60 = vmax.f32 %v620_v55, 0.0  ;;  %v629_v23 = vmax.f32 %v621_v56, 0.0  ;;  %v630_v40 = vmax.f32 %v622_v58, 0.0  ;;  %v631_v61 = vmax.f32 %v623_v57, 0.0 }
  0xfc   :  { %780 = vmatmul.f32.vlgmr.msra.gmra.mxu0 %v624_v47  ;;  %800 = vmatmul.f32.vlgmr.msra.gmra.mxu1 %v625_v59 }
  0xfd   :  { %820 = vmatmul.f32.vlgmr.msra.gmra.mxu2 %v626_v49  ;;  %840 = vmatmul.f32.vlgmr.msra.gmra.mxu3 %v627_v52 }
 0x104   :  { %860 = vmatmul.f32.vlgmr.msrb.gmra.mxu0 %v628_v60  ;;  %880 = vmatmul.f32.vlgmr.msrb.gmra.mxu1 %v629_v23 }
 0x105   :  { %900 = vmatmul.f32.vlgmr.msrb.gmra.mxu2 %v630_v40  ;;  %920 = vmatmul.f32.vlgmr.msrb.gmra.mxu3 %v631_v61 }
 0x179   :  { %v781_v8 = vpop.f32.mrf.mxu0  ;;  %v801_v63 = vpop.f32.mrf.mxu1 }
 0x17a   :  { %v782_v16 = vadd.f32 %v962_v50, %v781_v8 }
 0x17c   :  { %v802_v9 = vadd.f32 %v801_v63, %v782_v16 }
 0x180   :  { %v821_v3 = vpop.f32.mrf.mxu2  ;;  %v841_v15 = vpop.f32.mrf.mxu3 }
 0x181   :  { %v822_v1 = vadd.f32 %v821_v3, %v802_v9  ;;  %v861_v2 = vpop.f32.mrf.mxu0  ;;  %v881_v62 = vpop.f32.mrf.mxu1 }
 0x183   :  { %v842_v32 = vadd.f32 %v841_v15, %v822_v1 }
 0x185   :  { %v862_v6 = vadd.f32 %v861_v2, %v842_v32 }
 0x187   :  { %v882_v7 = vadd.f32 %v881_v62, %v862_v6 }
 0x188   :  { %v901_v29 = vpop.f32.mrf.mxu2  ;;  %v921_v18 = vpop.f32.mrf.mxu3 }
 0x189   :  { %v902_v14 = vadd.f32 %v901_v29, %v882_v7 }
 0x18b   :  { %v922_v21 = vadd.f32 %v921_v18, %v902_v14 }
 0x18d   :  { %924 = vst [vmem:[#allocation11] sm:$0xff] %v922_v21 }
 0x18e   :  { %935 = dma.vmem_to_hbm [thread:$0]  %s931_s24, 128, %s933_s27, [#allocation4]  }
 0x18f   :  { %1129 = dma.done.wait [#allocation4], 128  }
 0x190   :  { %1130 = vsyncadd [#allocation4], 4294967168 }
 0x191   :  { %940 = vsyncpa [#allocation3], 1 }
 0x192   :  { %941 = vsyncpa [#allocation6], 1 }
 0x193   :  { %942 = vsyncpa [#allocation9], 1 }
 0x194   :  { %943 = vsyncpa [#allocation4], 1 }

</bundles_post_ra>
